<compile_context>
chip_gen: v7x
topology: tpu7x:2x2x1
jax: 0.10.0
libtpu: 0.0.40
codegen_flags: <defaults>
</compile_context>

<pallas_src>
import jax
import jax.numpy as jnp
from jax.experimental import pallas as pl
from jax.experimental.pallas import tpu as pltpu


# ---------------------------------------------------------------------------
# Kernel
# ---------------------------------------------------------------------------
def _gcnm_block_kernel(x_ref, diag_ref, w_ref, b_ref, mask_ref, o_ref):
    """GLU-gated graph block for a tile of TILE_N nodes.

    x_ref:    (TILE_N, B, C)   second-half data tile (un-scaled) = x_origin
    diag_ref: (TILE_N, 1, 1)   adj[i, i] for the nodes in this tile
    w_ref:    (C, 2C)          weight.T   (fused lhs|rhs halves of the Linear)
    b_ref:    (1, 2C)          bias
    mask_ref: (TILE_N, B, C)   missing-value mask (int8 / bool / float)
    o_ref:    (TILE_N, B, C)   output
    """
    tn, bsz, c = x_ref.shape

    x = x_ref[...]                                    # (TN, B, C) original values
    d = diag_ref[...]                                 # (TN, 1, 1) adj[i, i]
    rows = (x * d).reshape(tn * bsz, c)               # flatten node/batch -> MXU rows

    # Single (TN*B, C) @ (C, 2C) matmul on the MXU, f32 accumulation.
    y = jnp.dot(rows, w_ref[...],
                preferred_element_type=jnp.float32) + b_ref[...]
    lhs = y[:, :c]                                    # lane-aligned when C % 128 == 0
    rhs = y[:, c:]
    glu = (lhs * jax.nn.sigmoid(rhs)).reshape(tn, bsz, c)

    # Blend: glu*(1-m) + x*m  ==  glu + m*(x - glu)   (one fewer VPU multiply).
    m = mask_ref[...].astype(jnp.float32)
    o_ref[...] = (glu + m * (x.astype(jnp.float32) - glu)).astype(o_ref.dtype)


# ---------------------------------------------------------------------------
# Generation-aware sizing helpers
# ---------------------------------------------------------------------------
def _vmem_capacity_bytes():
    """Physical VMEM of the attached TPU; conservative 64 MiB fallback (v7x)."""
    try:
        return int(pltpu.get_tpu_info().vmem_capacity_bytes)
    except Exception:
        return 64 * 1024 * 1024


def _num_tensorcores_per_chip():
    """2 TensorCores per chip on v7x (megacore grid sharding); 1 on v5e/v6e."""
    try:
        kind = (jax.devices()[0].device_kind or "").lower()
    except Exception:
        return 1
    return 2 if ("v7" in kind or "7x" in kind) else 1


def _pick_tile_n(n, b, c, x_itemsize, mask_itemsize, budget_bytes, min_steps):
    """Largest divisor of n whose full VMEM footprint (double-buffered x/mask/out
    streams + f32 matmul/GLU temporaries) fits `budget_bytes`, with at least
    `min_steps` grid steps (min_steps=2 only on multi-TensorCore chips)."""
    def footprint(tn):
        rows = tn * b * c
        stream = 2 * rows * (2 * x_itemsize + mask_itemsize)   # x, out, mask (x2 buf)
        temps = 4 * rows * 4                                   # rows + y(2C) + glu, f32
        return stream + temps

    best = 1
    for d in range(1, n + 1):
        if n % d != 0:
            continue
        if footprint(d) > budget_bytes:
            continue
        if n >= min_steps and (n // d) < min_steps:
            continue
        best = d
    return best


# ---------------------------------------------------------------------------
# Wrapper
# ---------------------------------------------------------------------------
def gcnm_block_forward(data, adj, mask_missing, weight, bias, *,
                       tile_n=None, stream_dtype=None):
    """data: (2N, B, C), adj: (2N, 2N), mask_missing: (N, B, C) (int8/bool
    recommended for a binary mask; float also accepted), weight: (2C, C)
    (PyTorch Linear layout), bias: (2C,).  Returns (N, B, C).

    stream_dtype: optionally cast data/weights/out to e.g. jnp.bfloat16 for
    production on v6e/v7x (halves the streamed HBM bytes; MXU still
    accumulates in f32)."""
    two_n, b, c = data.shape
    n = two_n // 2
    assert mask_missing.shape == (n, b, c)
    assert weight.shape == (2 * c, c) and bias.shape == (2 * c,)

    if stream_dtype is not None:
        data = data.astype(stream_dtype)
        weight = weight.astype(stream_dtype)
    x_dtype = data.dtype
    x_itemsize = jnp.dtype(x_dtype).itemsize

    # Stream a binary mask as int8 (25% fewer HBM bytes than f32); keep float
    # masks as-is so soft masks stay exact.
    if jnp.issubdtype(mask_missing.dtype, jnp.bool_) or \
       jnp.issubdtype(mask_missing.dtype, jnp.integer):
        mask_stream = mask_missing.astype(jnp.int8)
    else:
        mask_stream = mask_missing
    mask_itemsize = jnp.dtype(mask_stream.dtype).itemsize

    # Tiny wrapper-side prep (O(N) + O(C^2) bytes).  `data` itself is NOT
    # sliced here -- the second-half offset lives in the index_map below.
    diag_half = jnp.diagonal(adj)[n:].reshape(n, 1, 1).astype(x_dtype)  # (N,1,1)
    w_fused = weight.T                                                   # (C, 2C)
    b_fused = bias.reshape(1, 2 * c).astype(jnp.float32)                 # (1, 2C)

    # Generation-aware VMEM accounting.
    vmem_cap = _vmem_capacity_bytes()
    vmem_limit = min(int(vmem_cap * 3 // 4), 112 * 1024 * 1024)          # 48 MiB v7x, 96 MiB v5e/v6e
    resident_bytes = (c * 2 * c) * x_itemsize + 2 * c * 4
    budget = int((vmem_limit - resident_bytes) * 0.85)                    # headroom
    min_steps = 2 if _num_tensorcores_per_chip() >= 2 else 1

    if tile_n is None:
        tile_n = _pick_tile_n(n, b, c, x_itemsize, mask_itemsize, budget, min_steps)
    assert n % tile_n == 0
    n_tiles = n // tile_n
    half_off = n_tiles                     # block-index offset to the 2nd half

    cost = pl.CostEstimate(
        flops=4 * n * b * c * c,                                  # (N*B,C)@(C,2C) MACs
        transcendentals=n * b * c,                                # sigmoid
        bytes_accessed=(2 * n * b * c * x_itemsize                # x + out
                        + n * b * c * mask_itemsize               # mask
                        + 2 * c * c * x_itemsize                  # weights
                        + n * 4 + 2 * c * 4),                     # diag + bias
    )

    return pl.pallas_call(
        _gcnm_block_kernel,
        out_shape=jax.ShapeDtypeStruct((n, b, c), x_dtype),
        grid=(n_tiles,),
        in_specs=[
            # data: read the second half in place via a block-index offset.
            pl.BlockSpec((tile_n, b, c), lambda i: (i + half_off, 0, 0)),
            pl.BlockSpec((tile_n, 1, 1), lambda i: (i, 0, 0)),    # adj diagonal
            pl.BlockSpec((c, 2 * c), lambda i: (0, 0)),           # W.T (resident)
            pl.BlockSpec((1, 2 * c), lambda i: (0, 0)),           # bias (resident)
            pl.BlockSpec((tile_n, b, c), lambda i: (i, 0, 0)),    # mask (int8)
        ],
        out_specs=pl.BlockSpec((tile_n, b, c), lambda i: (i, 0, 0)),
        compiler_params=pltpu.CompilerParams(
            dimension_semantics=("parallel",),
            vmem_limit_bytes=vmem_limit),
        cost_estimate=cost,
    )(data, diag_half, w_fused, b_fused, mask_stream)


# ---------------------------------------------------------------------------
# Pure-JAX reference (literal PyTorch forward)
# ---------------------------------------------------------------------------
def gcnm_block_reference(data, adj, mask_missing, weight, bias):
    n = data.shape[0] // 2
    c = data.shape[2]
    x_origin = data[n:]
    scaled = jnp.einsum('ii,ijk->ijk', adj, data)
    y = jnp.einsum('ijk,lk->ijl', scaled, weight) + bias      # Linear(C -> 2C)
    lhs, rhs = y[..., :c], y[..., c:]
    g = lhs * jax.nn.sigmoid(rhs)
    g = g[n:]
    m = mask_missing.astype(data.dtype)
    return g * (1.0 - m) + x_origin * m


if __name__ == "__main__":
    # Small shapes consistent with the module: 2N nodes, B batch, C features.
    # C = 128 keeps loads, the GLU lane split, the blend and stores 128-lane
    # dense.
    N, B, C = 8, 8, 128
    key = jax.random.PRNGKey(0)
    k_data, k_adj, k_mask, k_w, k_b = jax.random.split(key, 5)

    data = jax.random.normal(k_data, (2 * N, B, C), dtype=jnp.float32)
    adj = jax.random.normal(k_adj, (2 * N, 2 * N), dtype=jnp.float32)
    # Binary missing-value mask streamed as int8 (HBM-bytes optimization).
    mask_missing = (jax.random.uniform(k_mask, (N, B, C)) > 0.5).astype(jnp.int8)

    # Deterministic Linear(C, 2C) parameters (PyTorch layout: weight (2C, C)).
    bound = 1.0 / (C ** 0.5)
    weight = jax.random.uniform(k_w, (2 * C, C), minval=-bound, maxval=bound,
                                dtype=jnp.float32)
    bias = jax.random.uniform(k_b, (2 * C,), minval=-bound, maxval=bound,
                              dtype=jnp.float32)

    out = gcnm_block_forward(data, adj, mask_missing, weight, bias)
    out = jax.block_until_ready(out)

    ref = gcnm_block_reference(data, adj, mask_missing, weight, bias)
    assert out.shape == (N, B, C)
    assert jnp.allclose(out, ref, atol=2e-4, rtol=2e-4), "mismatch vs reference"

    print("KERNEL_OK")
</pallas_src>

<mosaic_0001>
module attributes {stable_mosaic.version = 11 : i64} {
  func.func @_gcnm_block_kernel(%arg0: i32, %arg1: memref<8x8x128xf32, #tpu.memory_space<vmem>>, %arg2: memref<8x1x1xf32, #tpu.memory_space<vmem>>, %arg3: memref<128x256xf32, #tpu.memory_space<vmem>>, %arg4: memref<1x256xf32, #tpu.memory_space<vmem>>, %arg5: memref<8x8x128xi8, #tpu.memory_space<vmem>>, %arg6: memref<8x8x128xf32, #tpu.memory_space<vmem>>) attributes {dimension_semantics = [#tpu.dimension_semantics<parallel>], iteration_bounds = array<i64: 1>, scalar_prefetch = 0 : i64, scratch_operands = 0 : i64, tpu.core_type = #tpu.core_type<tc>, window_params = [{transform_indices = @transform_0, window_bounds = array<i64: 8, 8, 128>}, {transform_indices = @transform_1, window_bounds = array<i64: 8, 1, 1>}, {pipeline_mode = #tpu.pipeline_mode<synchronous>, transform_indices = @transform_2, window_bounds = array<i64: 128, 256>}, {pipeline_mode = #tpu.pipeline_mode<synchronous>, transform_indices = @transform_3, window_bounds = array<i64: 1, 256>}, {transform_indices = @transform_4, window_bounds = array<i64: 8, 8, 128>}, {transform_indices = @transform_5, window_bounds = array<i64: 8, 8, 128>}]} {
    %c0 = arith.constant 0 : index
    %c0_0 = arith.constant 0 : index
    %c0_1 = arith.constant 0 : index
    %0 = vector.load %arg1[%c0, %c0_0, %c0_1] : memref<8x8x128xf32, #tpu.memory_space<vmem>>, vector<8x8x128xf32>
    %c0_2 = arith.constant 0 : index
    %c0_3 = arith.constant 0 : index
    %c0_4 = arith.constant 0 : index
    %1 = vector.load %arg2[%c0_2, %c0_3, %c0_4] : memref<8x1x1xf32, #tpu.memory_space<vmem>>, vector<8x1x1xf32>
    %2 = vector.broadcast %1 : vector<8x1x1xf32> to vector<8x8x128xf32>
    %3 = arith.mulf %0, %2 : vector<8x8x128xf32>
    %4 = vector.shape_cast %3 : vector<8x8x128xf32> to vector<64x128xf32>
    %c0_5 = arith.constant 0 : index
    %c0_6 = arith.constant 0 : index
    %5 = vector.load %arg3[%c0_5, %c0_6] : memref<128x256xf32, #tpu.memory_space<vmem>>, vector<128x256xf32>
    %cst = arith.constant dense<0.000000e+00> : vector<64x256xf32>
    %6 = tpu.matmul %4, %5, %cst {dimension_numbers = #tpu.dot_dimension_numbers<[1], [0], [0], [1], [0, 0, 1, 1], [], []>} : vector<64x128xf32>, vector<128x256xf32>, vector<64x256xf32> -> vector<64x256xf32>
    %c0_7 = arith.constant 0 : index
    %c0_8 = arith.constant 0 : index
    %7 = vector.load %arg4[%c0_7, %c0_8] : memref<1x256xf32, #tpu.memory_space<vmem>>, vector<1x256xf32>
    %8 = vector.broadcast %7 : vector<1x256xf32> to vector<64x256xf32>
    %9 = arith.addf %6, %8 : vector<64x256xf32>
    %10 = vector.extract_strided_slice %9 {offsets = [0, 0], sizes = [64, 128], strides = [1, 1]} : vector<64x256xf32> to vector<64x128xf32>
    %11 = vector.extract_strided_slice %9 {offsets = [0, 128], sizes = [64, 128], strides = [1, 1]} : vector<64x256xf32> to vector<64x128xf32>
    %12 = arith.negf %11 : vector<64x128xf32>
    %13 = math.exp %12 : vector<64x128xf32>
    %cst_9 = arith.constant 1.000000e+00 : f32
    %14 = vector.broadcast %cst_9 : f32 to vector<64x128xf32>
    %15 = arith.addf %14, %13 : vector<64x128xf32>
    %16 = arith.divf %14, %15 : vector<64x128xf32>
    %17 = arith.mulf %10, %16 : vector<64x128xf32>
    %18 = vector.shape_cast %17 : vector<64x128xf32> to vector<8x8x128xf32>
    %c0_10 = arith.constant 0 : index
    %c0_11 = arith.constant 0 : index
    %c0_12 = arith.constant 0 : index
    %19 = vector.load %arg5[%c0_10, %c0_11, %c0_12] : memref<8x8x128xi8, #tpu.memory_space<vmem>>, vector<8x8x128xi8>
    %20 = arith.sitofp %19 : vector<8x8x128xi8> to vector<8x8x128xf32>
    %21 = arith.subf %0, %18 : vector<8x8x128xf32>
    %22 = arith.mulf %20, %21 : vector<8x8x128xf32>
    %23 = arith.addf %18, %22 : vector<8x8x128xf32>
    %c0_13 = arith.constant 0 : index
    %c0_14 = arith.constant 0 : index
    %c0_15 = arith.constant 0 : index
    %24 = vector.load %arg6[%c0_13, %c0_14, %c0_15] : memref<8x8x128xf32, #tpu.memory_space<vmem>>, vector<8x8x128xf32>
    tpu.vector_store %arg6[%c0_13, %c0_14, %c0_15], %23 {strides = array<i32>} : memref<8x8x128xf32, #tpu.memory_space<vmem>>, vector<8x8x128xf32>,
    return
  }
  func.func @transform_0(%arg0: i32) -> (i32, i32, i32) {
    %c1_i32 = arith.constant 1 : i32
    %0 = arith.addi %arg0, %c1_i32 : i32
    %c0_i32 = arith.constant 0 : i32
    %c0_i32_0 = arith.constant 0 : i32
    %c0_i32_1 = arith.constant 0 : i32
    return %0, %c0_i32, %c0_i32_0 : i32, i32, i32
  }
  func.func @transform_1(%arg0: i32) -> (i32, i32, i32) {
    %c0_i32 = arith.constant 0 : i32
    %c0_i32_0 = arith.constant 0 : i32
    %c0_i32_1 = arith.constant 0 : i32
    return %arg0, %c0_i32, %c0_i32_0 : i32, i32, i32
  }
  func.func @transform_2(%arg0: i32) -> (i32, i32) {
    %c0_i32 = arith.constant 0 : i32
    %c0_i32_0 = arith.constant 0 : i32
    %c0_i32_1 = arith.constant 0 : i32
    return %c0_i32, %c0_i32_0 : i32, i32
  }
  func.func @transform_3(%arg0: i32) -> (i32, i32) {
    %c0_i32 = arith.constant 0 : i32
    %c0_i32_0 = arith.constant 0 : i32
    %c0_i32_1 = arith.constant 0 : i32
    return %c0_i32, %c0_i32_0 : i32, i32
  }
  func.func @transform_4(%arg0: i32) -> (i32, i32, i32) {
    %c0_i32 = arith.constant 0 : i32
    %c0_i32_0 = arith.constant 0 : i32
    %c0_i32_1 = arith.constant 0 : i32
    return %arg0, %c0_i32, %c0_i32_0 : i32, i32, i32
  }
  func.func @transform_5(%arg0: i32) -> (i32, i32, i32) {
    %c0_i32 = arith.constant 0 : i32
    %c0_i32_0 = arith.constant 0 : i32
    %c0_i32_1 = arith.constant 0 : i32
    return %arg0, %c0_i32, %c0_i32_0 : i32, i32, i32
  }
}

</mosaic_0001>

<bundles_post_ra>
// kernel: tpu_custom_call.1
= control target key start
LH: loop header
LB: loop body
LE: loop exit
PB: predicated region body
PF: predicated region fallthrough
CT: control target
= control target key end

     0   :  { %10 = vsyncpa [#allocation3], 0  ;;  %s828_s0 = inlined_call_operand.hbm [shape: f32[16,8,128], index: 0, kind: input, shape index: {}]   ;;  %s829_s1 = inlined_call_operand.vmem [shape: f32[8,1,1], index: 1, kind: input, shape index: {}]   ;;  %s830_s2 = inlined_call_operand.hbm [shape: f32[128,256], index: 2, kind: input, shape index: {}]   ;;  %s831_s3 = inlined_call_operand.vmem [shape: f32[1,256], index: 3, kind: input, shape index: {}]   ;;  %s832_s4 = inlined_call_operand.vmem [shape: s8[8,8,128], index: 4, kind: input, shape index: {}]   ;;  %s833_s5 = inlined_call_operand.hbm [shape: f32[8,8,128], index: 5, kind: output, shape index: {}]  }
   0x1   :  { %11 = vsyncpa [#allocation6], 0 }
   0x2   :  { %12 = vsyncpa [#allocation4], 0  ;;  %s438_s20 = scalar_lea.hbm %s828_s0, 1024  ;;  %s640_s21 = smov [#allocation2]  }
   0x3   :  { %s22_s22 = sshll.u32 %s640_s21, 4  ;;  %s589_s25 = scalar_lea.hbm %s828_s0, 2048  ;;  %s23_s22 = int_to_ptr.vmem [resolvable:$true] %s22_s22 }
   0x4   :  { %p566_p0 = scmp.ne.s32.totalorder %s438_s20, %s589_s25  ;;  %p568_p1 = scmp.lt.u32.totalorder %s438_s20, %s828_s0 }
   0x5   :  { %p569_p2 = scmp.lt.u32.totalorder %s589_s25, %s589_s25  ;;  %p571_p4 = scmp.lt.u32.totalorder %s589_s25, %s438_s20 }
   0x7   :  { %p570_p3 = por %p569_p2, %p568_p1 }
   0x9   :  { %p572_p5 = por %p571_p4, %p570_p3 }
   0xb   :  { %p573_p6 = pnand %p572_p5, %p566_p0 }
   0xd   :  { %576 = shalt.err (!%p573_p6)
}
   0xe   :  { %s577_s28 = scalar_lea.vmem %s23_s22, 1024  ;;  %p582_p8 = scmp.lt.s32.totalorder %s23_s22, %s23_s22 }
   0xf   :  { %p578_p7 = scmp.ne.s32.totalorder %s23_s22, %s577_s28  ;;  %p583_p9 = scmp.lt.s32.totalorder %s577_s28, %s577_s28 }
  0x11   :  { %p584_p10 = por %p583_p9, %p582_p8 }
  0x13   :  { %p585_p11 = pnand %p584_p10, %p578_p7 }
  0x15   :  { %588 = shalt.err (!%p585_p11)
}
  0x16   :  { %s641_s29 = smov 128   ;;  %s642_s30 = smov 8  }
  0x17   :  { %28 = dma.hbm_to_vmem [thread:$0]  %s438_s20, 1024, %s23_s22, [#allocation3], %s641_s29, %s641_s29, %s642_s30  }
  0x18   :  { %s643_s0 = smov [#allocation5]   ;;  %s590_s9 = scalar_lea.hbm %s830_s2, 4096 }
  0x19   :  { %s36_s6 = sshll.u32 %s643_s0, 4  ;;  %p591_p12 = scmp.ne.s32.totalorder %s830_s2, %s590_s9  ;;  %s37_s6 = int_to_ptr.vmem [resolvable:$true] %s36_s6 }
  0x1a   :  { %p594_p13 = scmp.lt.u32.totalorder %s590_s9, %s830_s2 }
  0x1c   :  { %p596_p0 = pnand %p594_p13, %p591_p12 }
  0x1e   :  { %599 = shalt.err (!%p596_p0)
}
  0x1f   :  { %s600_s14 = scalar_lea.vmem %s37_s6, 4096  ;;  %p605_p2 = scmp.lt.s32.totalorder %s37_s6, %s37_s6 }
  0x20   :  { %p601_p1 = scmp.ne.s32.totalorder %s37_s6, %s600_s14  ;;  %p606_p3 = scmp.lt.s32.totalorder %s600_s14, %s600_s14 }
  0x22   :  { %p607_p4 = por %p606_p3, %p605_p2 }
  0x24   :  { %p608_p5 = pnand %p607_p4, %p601_p1 }
  0x26   :  { %611 = shalt.err (!%p608_p5)
}
  0x27   :  { %s644_s15 = smov 256   ;;  %s645_s16 = smov 16  }
  0x28   :  { %42 = dma.hbm_to_vmem [thread:$0]  %s830_s2, 4096, %s37_s6, [#allocation6], %s644_s15, %s644_s15, %s645_s16  }
  0x29   :  { %634 = dma.done.wait [#allocation3], 1024  }
  0x2a   :  { %635 = vsyncadd [#allocation3], 4294966272 }
  0x2b   :  { %636 = dma.done.wait [#allocation6], 4096  }
  0x2c   :  { %637 = vsyncadd [#allocation6], 4294963200  ;;  %v646_v0 = vmov 0   ;;  %v440_v1 = vld [vmem:[%s829_s1 + $0x1] ss:$0 sm:$0xff]  ;;  %v152_v5 = vld [vmem:[#allocation5 + $0x8] sm:$0xff] }
  0x2d   :  { %532 = vset.pattern.permute.xlu1 %v646_v0  ;;  %531 = vset.pattern.permute.xlu0 %v646_v0  ;;  %v439_v2 = vld [vmem:[%s829_s1] ss:$0 sm:$0xff]  ;;  %v444_v3 = vld [vmem:[%s829_s1 + $0x5] ss:$0 sm:$0xff]  ;;  %v443_v4 = vld [vmem:[%s829_s1 + $0x4] ss:$0 sm:$0xff] }
  0x2e   :  { %116 = vperm.xlu1 %532, %v440_v1   ;;  %112 = vperm.xlu0 %531, %v439_v2   ;;  %v154_v6 = vld [vmem:[#allocation5 + $0x18] sm:$0xff]  ;;  %v151_v7 = vld [vmem:[#allocation5] sm:$0xff]  ;;  %v153_v8 = vld [vmem:[#allocation5 + $0x10] sm:$0xff]  ;;  %v647_v9 = vmov 0.0  }
  0x2f   :  { %259 = vmatprep.mubr.f32.mxu0 %v647_v9  ;;  %283 = vmatprep.mubr.f32.mxu1 %v647_v9  ;;  %v471_v10 = vpack.c.bf16 %v154_v6, %v152_v5  ;;  %v473_v11 = vpack.c.bf16 %v153_v8, %v151_v7  ;;  %v156_v12 = vld [vmem:[#allocation5 + $0x28] sm:$0xff]  ;;  %v158_v13 = vld [vmem:[#allocation5 + $0x38] sm:$0xff]  ;;  %v155_v14 = vld [vmem:[#allocation5 + $0x20] sm:$0xff] }
  0x30   :  { %v475_v15 = vpack.c.bf16 %v158_v13, %v156_v12  ;;  %v157_v16 = vld [vmem:[#allocation5 + $0x30] sm:$0xff]  ;;  %v160_v17 = vld [vmem:[#allocation5 + $0x48] sm:$0xff]  ;;  %v162_v18 = vld [vmem:[#allocation5 + $0x58] sm:$0xff] }
  0x31   :  { %v445_v19 = vld [vmem:[%s829_s1 + $0x6] ss:$0 sm:$0xff]  ;;  %v441_v20 = vld [vmem:[%s829_s1 + $0x2] ss:$0 sm:$0xff]  ;;  %472 = vmatprep.subr.bf16.mxu0 %v471_v10  ;;  %503 = vmatprep.subr.bf16.mxu1 %v471_v10  ;;  %v477_v21 = vpack.c.bf16 %v157_v16, %v155_v14  ;;  %v479_v22 = vpack.c.bf16 %v162_v18, %v160_v17  ;;  %v161_v24 = vld [vmem:[#allocation5 + $0x50] sm:$0xff] }
  0x32   :  { %132 = vperm.xlu1 %532, %v444_v3   ;;  %128 = vperm.xlu0 %531, %v443_v4   ;;  %v159_v23 = vld [vmem:[#allocation5 + $0x40] sm:$0xff]  ;;  %v164_v25 = vld [vmem:[#allocation5 + $0x68] sm:$0xff]  ;;  %v166_v26 = vld [vmem:[#allocation5 + $0x78] sm:$0xff] }
  0x33   :  { %474 = vmatpush1.bf16.msra.mxu0 %v473_v11  ;;  %511 = vmatpush1.bf16.msra.mxu1 %v473_v11  ;;  %v446_v27 = vld [vmem:[%s829_s1 + $0x7] ss:$0 sm:$0xff]  ;;  %v442_v28 = vld [vmem:[%s829_s1 + $0x3] ss:$0 sm:$0xff]  ;;  %v481_v29 = vpack.c.bf16 %v161_v24, %v159_v23  ;;  %v483_v30 = vpack.c.bf16 %v166_v26, %v164_v25  ;;  %v165_v32 = vld [vmem:[#allocation5 + $0x70] sm:$0xff] }
  0x34   :  { %476 = vmatprep.subr.bf16.mxu0 %v475_v15  ;;  %504 = vmatprep.subr.bf16.mxu1 %v475_v15  ;;  %v163_v31 = vld [vmem:[#allocation5 + $0x60] sm:$0xff]  ;;  %v168_v33 = vld [vmem:[#allocation5 + $0x88] sm:$0xff]  ;;  %v170_v34 = vld [vmem:[#allocation5 + $0x98] sm:$0xff] }
  0x35   :  { %v485_v35 = vpack.c.bf16 %v165_v32, %v163_v31  ;;  %v487_v36 = vpack.c.bf16 %v170_v34, %v168_v33  ;;  %v167_v37 = vld [vmem:[#allocation5 + $0x80] sm:$0xff]  ;;  %v169_v38 = vld [vmem:[#allocation5 + $0x90] sm:$0xff]  ;;  %v172_v39 = vld [vmem:[#allocation5 + $0xa8] sm:$0xff] }
  0x36   :  { %136 = vperm.xlu1 %532, %v445_v19   ;;  %120 = vperm.xlu0 %531, %v441_v20   ;;  %v174_v40 = vld [vmem:[#allocation5 + $0xb8] sm:$0xff]  ;;  %v489_v41 = vpack.c.bf16 %v169_v38, %v167_v37  ;;  %v171_v43 = vld [vmem:[#allocation5 + $0xa0] sm:$0xff]  ;;  %v173_v44 = vld [vmem:[#allocation5 + $0xb0] sm:$0xff]  ;;  %v185_v19 = vlaneseq }
  0x37   :  { %478 = vmatpush1.bf16.msra.mxu0 %v477_v21  ;;  %512 = vmatpush1.bf16.msra.mxu1 %v477_v21  ;;  %v491_v42 = vpack.c.bf16 %v174_v40, %v172_v39  ;;  %v176_v45 = vld [vmem:[#allocation5 + $0xc8] sm:$0xff]  ;;  %v178_v46 = vld [vmem:[#allocation5 + $0xd8] sm:$0xff]  ;;  %v493_v47 = vpack.c.bf16 %v173_v44, %v171_v43  ;;  %v175_v49 = vld [vmem:[#allocation5 + $0xc0] sm:$0xff] }
  0x38   :  { %480 = vmatprep.subr.bf16.mxu0 %v479_v22  ;;  %505 = vmatprep.subr.bf16.mxu1 %v479_v22  ;;  %v495_v48 = vpack.c.bf16 %v178_v46, %v176_v45  ;;  %v177_v50 = vld [vmem:[#allocation5 + $0xd0] sm:$0xff]  ;;  %v180_v51 = vld [vmem:[#allocation5 + $0xe8] sm:$0xff]  ;;  %v182_v52 = vld [vmem:[#allocation5 + $0xf8] sm:$0xff]  ;;  %v186_v20 = vshrl.u32 %v185_v19, 7 }
  0x39   :  { %v497_v53 = vpack.c.bf16 %v177_v50, %v175_v49  ;;  %v499_v54 = vpack.c.bf16 %v182_v52, %v180_v51  ;;  %v179_v55 = vld [vmem:[#allocation5 + $0xe0] sm:$0xff]  ;;  %v181_v56 = vld [vmem:[#allocation5 + $0xf0] sm:$0xff]  ;;  %v731_v60 = vld [vmem:[#allocation2 + $0x8] sm:$0xff] }
  0x3a   :  { %140 = vperm.xlu1 %532, %v446_v27   ;;  %124 = vperm.xlu0 %531, %v442_v28   ;;  %v501_v57 = vpack.c.bf16 %v181_v56, %v179_v55  ;;  %v729_v58 = vld [vmem:[#allocation2] sm:$0xff]  ;;  %v739_v4 = vld [vmem:[#allocation2 + $0x28] sm:$0xff]  ;;  %v741_v5 = vld [vmem:[#allocation2 + $0x10] sm:$0xff]  ;;  %v191_v21 = vsub.s32 1, %v186_v20 }
  0x3b   :  { %482 = vmatpush1.bf16.msra.mxu0 %v481_v29  ;;  %513 = vmatpush1.bf16.msra.mxu1 %v481_v29  ;;  %v734_v63 = vld [vmem:[#allocation2 + $0x20] sm:$0xff]  ;;  %v747_v11 = vld [vmem:[#allocation2 + $0x30] sm:$0xff]  ;;  %v749_v12 = vld [vmem:[#allocation2 + $0x18] sm:$0xff] }
  0x3c   :  { %484 = vmatprep.subr.bf16.mxu0 %v483_v30  ;;  %506 = vmatprep.subr.bf16.mxu1 %v483_v30  ;;  %v755_v17 = vld [vmem:[#allocation2 + $0x38] sm:$0xff]  ;;  %v183_v22 = vld [vmem:[%s831_s3] sm:$0x3] }
  0x3d   :  { %v192_v23 = vrot.slane %v183_v22, %v191_v21 }
  0x3f   :  { %486 = vmatpush1.bf16.msra.mxu0 %v485_v35  ;;  %514 = vmatpush1.bf16.msra.mxu1 %v485_v35 }
  0x40   :  { %488 = vmatprep.subr.bf16.mxu0 %v487_v36  ;;  %507 = vmatprep.subr.bf16.mxu1 %v487_v36 }
  0x43   :  { %490 = vmatpush1.bf16.msra.mxu0 %v489_v41  ;;  %515 = vmatpush1.bf16.msra.mxu1 %v489_v41 }
  0x44   :  { %492 = vmatprep.subr.bf16.mxu0 %v491_v42  ;;  %508 = vmatprep.subr.bf16.mxu1 %v491_v42 }
  0x47   :  { %494 = vmatpush1.bf16.msra.mxu0 %v493_v47  ;;  %516 = vmatpush1.bf16.msra.mxu1 %v493_v47 }
  0x48   :  { %496 = vmatprep.subr.bf16.mxu0 %v495_v48  ;;  %509 = vmatprep.subr.bf16.mxu1 %v495_v48 }
  0x4b   :  { %498 = vmatpush1.bf16.msra.mxu0 %v497_v53  ;;  %517 = vmatpush1.bf16.msra.mxu1 %v497_v53 }
  0x4c   :  { %500 = vmatprep.subr.bf16.mxu0 %v499_v54  ;;  %510 = vmatprep.subr.bf16.mxu1 %v499_v54 }
  0x4f   :  { %502 = vmatpush1.bf16.msra.mxu0 %v501_v57  ;;  %518 = vmatpush1.bf16.msra.mxu1 %v501_v57  ;;  %v187_v57 = vsub.s32 0, %v186_v20 }
  0xad   :  { %v117_v59 = vpop.permute.xlu1 %116  ;;  %v113_v61 = vpop.permute.xlu0 %112 }
  0xae   :  { %v143_v62 = vmul.f32 %v113_v61, %v729_v58  ;;  %v144_v0 = vmul.f32 %v117_v59, %v731_v60 }
  0xb0   :  { %260 = vmatmul.mubr.f32.vlgmr.msra.gmra.mrb[0].mxu0 %v143_v62 }
  0xb1   :  { %v133_v1 = vpop.permute.xlu1 %132  ;;  %v129_v2 = vpop.permute.xlu0 %128  ;;  %265 = vmatprep.mubr.f32.mxu0 %v647_v9 }
  0xb2   :  { %v147_v3 = vmul.f32 %v129_v2, %v734_v63  ;;  %v148_v8 = vmul.f32 %v133_v1, %v739_v4  ;;  %v456_v1 = vld [vmem:[%s832_s4] sm:$0xff]  }
  0xb4   :  { %266 = vmatmul.mubr.f32.gmra.mrb[2].mxu0 %v144_v0  ;;  %284 = vmatmul.mubr.f32.vlgmr.msra.gmra.mrb[0].mxu1 %v147_v3  ;;  %v779_v3 = vrot.slane %v183_v22, %v187_v57  ;;  %v458_v22 = vunpack.c.1.s8 %v456_v1 }
  0xb5   :  { %v137_v6 = vpop.permute.xlu1 %136  ;;  %v121_v7 = vpop.permute.xlu0 %120  ;;  %271 = vmatprep.mubr.f32.mxu0 %v647_v9  ;;  %289 = vmatprep.mubr.f32.mxu1 %v647_v9 }
  0xb6   :  { %v145_v10 = vmul.f32 %v121_v7, %v741_v5  ;;  %v149_v14 = vmul.f32 %v137_v6, %v747_v11 }
  0xb8   :  { %272 = vmatmul.mubr.f32.gmra.mrb[4].mxu0 %v145_v10  ;;  %290 = vmatmul.mubr.f32.gmra.mrb[2].mxu1 %v148_v8  ;;  %v457_v8 = vunpack.c.0.s8 %v456_v1 }
  0xb9   :  { %v125_v13 = vpop.permute.xlu0 %124  ;;  %277 = vmatprep.mubr.f32.mxu0 %v647_v9  ;;  %295 = vmatprep.mubr.f32.mxu1 %v647_v9  ;;  %v141_v16 = vpop.permute.xlu1 %140 }
  0xba   :  { %v146_v15 = vmul.f32 %v125_v13, %v749_v12  ;;  %v150_v18 = vmul.f32 %v141_v16, %v755_v17  ;;  %v380_v21 = vcvt.s32.f32 %v457_v8 }
  0xbc   :  { %278 = vmatmul.mubr.f32.gmra.mrb[6].mxu0 %v146_v15  ;;  %296 = vmatmul.mubr.f32.gmra.mrb[4].mxu1 %v149_v14  ;;  %v785_v15 = vld [vmem:[%s832_s4 + $0x8] sm:$0xff]   ;;  %s648_s4 = smov [#allocation7]  }
  0xbd   :  { %301 = vmatprep.mubr.f32.mxu1 %v647_v9  ;;  %s425_s14 = sshll.u32 %s648_s4, 4  ;;  %s426_s14 = int_to_ptr.vmem [resolvable:$true] %s425_s14 }
  0xbe   :  { %s612_s15 = scalar_lea.vmem %s426_s14, 1024  ;;  %p617_p7 = scmp.lt.s32.totalorder %s426_s14, %s426_s14 }
  0xbf   :  { %p613_p6 = scmp.ne.s32.totalorder %s426_s14, %s612_s15  ;;  %p618_p8 = scmp.lt.s32.totalorder %s612_s15, %s612_s15 }
  0xc0   :  { %302 = vmatmul.mubr.f32.gmra.mrb[6].mxu1 %v150_v18 }
  0xc1   :  { %p619_p9 = por %p618_p8, %p617_p7 }
  0xc3   :  { %p620_p10 = pnand %p619_p9, %p613_p6 }
 0x183   :  { %v261_v24 = vpop.f32.mrb[0].mxu0 }
 0x184   :  { %v263_v25 = vpop.f32.mrb[1].mxu0  ;;  %v262_v14 = vadd.f32 %v261_v24, %v779_v3 }
 0x185   :  { %v264_v26 = vadd.f32 %v263_v25, %v192_v23 }
 0x187   :  { %v447_v27 = vmul.f32 -1.442695, %v264_v26  ;;  %v762_v28 = vpop.f32.mrb[2].mxu0  ;;  %v764_v29 = vpop.f32.mrb[0].mxu1 }
 0x188   :  { %v269_v9 = vpop.f32.mrb[3].mxu0  ;;  %v287_v30 = vpop.f32.mrb[1].mxu1  ;;  %v268_v24 = vadd.f32 %v762_v28, %v779_v3 }
 0x189   :  { %533 = vpow2.f32 %v447_v27  ;;  %v270_v31 = vadd.f32 %v269_v9, %v192_v23  ;;  %v288_v32 = vadd.f32 %v287_v30, %v192_v23  ;;  %v286_v30 = vadd.f32 %v764_v29, %v779_v3 }
 0x18b   :  { %v448_v33 = vmul.f32 -1.442695, %v270_v31  ;;  %v451_v34 = vmul.f32 -1.442695, %v288_v32  ;;  %v766_v35 = vpop.f32.mrb[4].mxu0  ;;  %v768_v36 = vpop.f32.mrb[2].mxu1 }
 0x18c   :  { %v275_v37 = vpop.f32.mrb[5].mxu0  ;;  %v293_v38 = vpop.f32.mrb[3].mxu1  ;;  %v274_v28 = vadd.f32 %v766_v35, %v779_v3 }
 0x18d   :  { %535 = vpow2.f32 %v448_v33  ;;  %v276_v39 = vadd.f32 %v275_v37, %v192_v23  ;;  %v294_v40 = vadd.f32 %v293_v38, %v192_v23  ;;  %v381_v37 = vcvt.s32.f32 %v458_v22 }
 0x18e   :  { %537 = vpow2.f32 %v451_v34  ;;  %v461_v38 = vunpack.c.2.s8 %v456_v1 }
 0x18f   :  { %v449_v41 = vmul.f32 -1.442695, %v276_v39  ;;  %v452_v42 = vmul.f32 -1.442695, %v294_v40  ;;  %v770_v43 = vpop.f32.mrb[6].mxu0  ;;  %v772_v44 = vpop.f32.mrb[4].mxu1 }
 0x190   :  { %v281_v45 = vpop.f32.mrb[7].mxu0  ;;  %v299_v46 = vpop.f32.mrb[5].mxu1 }
 0x191   :  { %539 = vpow2.f32 %v449_v41  ;;  %v282_v47 = vadd.f32 %v281_v45, %v192_v23  ;;  %v300_v48 = vadd.f32 %v299_v46, %v192_v23  ;;  %v466_v41 = vunpack.c.1.s8 %v785_v15 }
 0x192   :  { %541 = vpow2.f32 %v452_v42  ;;  %v292_v46 = vadd.f32 %v768_v36, %v779_v3 }
 0x193   :  { %v534_v49 = vpop.eup %533  ;;  %v450_v50 = vmul.f32 -1.442695, %v282_v47  ;;  %v453_v51 = vmul.f32 -1.442695, %v300_v48  ;;  %v774_v52 = vpop.f32.mrb[6].mxu1  ;;  %v462_v47 = vunpack.c.3.s8 %v456_v1 }
 0x194   :  { %v332_v53 = vadd.f32 1.0, %v534_v49  ;;  %v305_v54 = vpop.f32.mrb[7].mxu1 }
 0x195   :  { %543 = vpow2.f32 %v450_v50  ;;  %v306_v55 = vadd.f32 %v305_v54, %v192_v23  ;;  %v465_v23 = vunpack.c.0.s8 %v785_v15 }
 0x196   :  { %545 = vrcp.f32 %v332_v53 }
 0x197   :  { %v536_v56 = vpop.eup %535  ;;  %547 = vpow2.f32 %v453_v51  ;;  %v454_v59 = vmul.f32 -1.442695, %v306_v55  ;;  %v384_v40 = vcvt.s32.f32 %v465_v23  ;;  %v382_v51 = vcvt.s32.f32 %v461_v38 }
 0x198   :  { %v538_v61 = vpop.eup %537  ;;  %v333_v62 = vadd.f32 1.0, %v536_v56  ;;  %v385_v55 = vcvt.s32.f32 %v466_v41 }
 0x199   :  { %v336_v0 = vadd.f32 1.0, %v538_v61  ;;  %549 = vpow2.f32 %v454_v59  ;;  %v383_v61 = vcvt.s32.f32 %v462_v47 }
 0x19a   :  { %551 = vrcp.f32 %v333_v62 }
 0x19b   :  { %v540_v2 = vpop.eup %539  ;;  %553 = vrcp.f32 %v336_v0  ;;  %v298_v0 = vadd.f32 %v772_v44, %v779_v3 }
 0x19c   :  { %v542_v6 = vpop.eup %541  ;;  %v334_v7 = vadd.f32 1.0, %v540_v2  ;;  %v470_v2 = vunpack.c.3.s8 %v785_v15 }
 0x19d   :  { %v337_v10 = vadd.f32 1.0, %v542_v6 }
 0x19e   :  { %555 = vrcp.f32 %v334_v7 }
 0x19f   :  { %v544_v13 = vpop.eup %543  ;;  %557 = vrcp.f32 %v337_v10 }
 0x1a0   :  { %v546_v16 = vpop.eup %545  ;;  %v335_v18 = vadd.f32 1.0, %v544_v13 }
 0x1a1   :  { %v548_v19 = vpop.eup %547  ;;  %v356_v20 = vmul.f32 %v546_v16, %v262_v14 }
 0x1a2   :  { %559 = vrcp.f32 %v335_v18  ;;  %v338_v25 = vadd.f32 1.0, %v548_v19  ;;  %v387_v19 = vcvt.s32.f32 %v470_v2 }
 0x1a3   :  { %v550_v26 = vpop.eup %549  ;;  %v388_v27 = vsub.f32 %v729_v58, %v356_v20 }
 0x1a4   :  { %v552_v9 = vpop.eup %551  ;;  %561 = vrcp.f32 %v338_v25  ;;  %v339_v31 = vadd.f32 1.0, %v550_v26 }
 0x1a5   :  { %v554_v32 = vpop.eup %553  ;;  %v396_v33 = vmul.f32 %v388_v27, %v380_v21  ;;  %v357_v34 = vmul.f32 %v552_v9, %v268_v24 }
 0x1a6   :  { %v360_v39 = vmul.f32 %v554_v32, %v286_v30  ;;  %563 = vrcp.f32 %v339_v31 }
 0x1a7   :  { %v404_v58 = vadd.f32 %v396_v33, %v356_v20  ;;  %v389_v42 = vsub.f32 %v731_v60, %v357_v34  ;;  %v469_v60 = vunpack.c.2.s8 %v785_v15 }
 0x1a8   :  { %v556_v45 = vpop.eup %555  ;;  %v392_v29 = vsub.f32 %v734_v63, %v360_v39  ;;  %v280_v63 = vadd.f32 %v770_v43, %v779_v3 }
 0x1a9   :  { %v558_v48 = vpop.eup %557  ;;  %412 = vst [vmem:[#allocation7] sm:$0xff] %v404_v58  ;;  %v397_v49 = vmul.f32 %v389_v42, %v381_v37  ;;  %v358_v50 = vmul.f32 %v556_v45, %v274_v28 }
 0x1aa   :  { %v400_v53 = vmul.f32 %v392_v29, %v384_v40  ;;  %v361_v54 = vmul.f32 %v558_v48, %v292_v46 }
 0x1ab   :  { %v405_v56 = vadd.f32 %v397_v49, %v357_v34  ;;  %v390_v35 = vsub.f32 %v741_v5, %v358_v50  ;;  %v386_v5 = vcvt.s32.f32 %v469_v60 }
 0x1ac   :  { %v560_v57 = vpop.eup %559  ;;  %v408_v59 = vadd.f32 %v400_v53, %v360_v39  ;;  %v393_v36 = vsub.f32 %v739_v4, %v361_v54  ;;  %v304_v4 = vadd.f32 %v774_v52, %v779_v3 }
 0x1ad   :  { %413 = vst [vmem:[#allocation7 + $0x8] sm:$0xff] %v405_v56  ;;  %v398_v62 = vmul.f32 %v390_v35, %v382_v51  ;;  %v359_v1 = vmul.f32 %v560_v57, %v280_v63 }
 0x1ae   :  { %v562_v6 = vpop.eup %561  ;;  %416 = vst [vmem:[#allocation7 + $0x20] sm:$0xff] %v408_v59  ;;  %v401_v7 = vmul.f32 %v393_v36, %v385_v55 }
 0x1af   :  { %v406_v8 = vadd.f32 %v398_v62, %v358_v50  ;;  %v391_v43 = vsub.f32 %v749_v12, %v359_v1  ;;  %v362_v10 = vmul.f32 %v562_v6, %v298_v0 }
 0x1b0   :  { %v564_v13 = vpop.eup %563  ;;  %v409_v14 = vadd.f32 %v401_v7, %v361_v54 }
 0x1b1   :  { %414 = vst [vmem:[#allocation7 + $0x10] sm:$0xff] %v406_v8  ;;  %v399_v16 = vmul.f32 %v391_v43, %v383_v61  ;;  %v394_v44 = vsub.f32 %v747_v11, %v362_v10  ;;  %v363_v18 = vmul.f32 %v564_v13, %v304_v4 }
 0x1b2   :  { %417 = vst [vmem:[#allocation7 + $0x28] sm:$0xff] %v409_v14 }
 0x1b3   :  { %v407_v15 = vadd.f32 %v399_v16, %v359_v1  ;;  %v402_v20 = vmul.f32 %v394_v44, %v386_v5  ;;  %v395_v21 = vsub.f32 %v755_v17, %v363_v18 }
 0x1b5   :  { %415 = vst [vmem:[#allocation7 + $0x18] sm:$0xff] %v407_v15  ;;  %v410_v12 = vadd.f32 %v402_v20, %v362_v10  ;;  %v403_v22 = vmul.f32 %v395_v21, %v387_v19 }
 0x1b7   :  { %418 = vst [vmem:[#allocation7 + $0x30] sm:$0xff] %v410_v12  ;;  %v411_v52 = vadd.f32 %v403_v22, %v363_v18 }
 0x1b9   :  { %419 = vst [vmem:[#allocation7 + $0x38] sm:$0xff] %v411_v52 }
 0x1ba   :  { %623 = shalt.err (!%p620_p10)
}
 0x1bb   :  { %s624_s18 = scalar_lea.hbm %s833_s5, 1024 }
 0x1bc   :  { %p625_p11 = scmp.ne.s32.totalorder %s833_s5, %s624_s18  ;;  %p628_p12 = scmp.lt.u32.totalorder %s624_s18, %s833_s5 }
 0x1be   :  { %p630_p13 = pnand %p628_p12, %p625_p11 }
 0x1c0   :  { %633 = shalt.err (!%p630_p13)
}
 0x1c1   :  { %431 = dma.vmem_to_hbm [thread:$0]  %s426_s14, 1024, %s833_s5, [#allocation4], %s641_s29, %s641_s29, %s642_s30  }
 0x1c2   :  { %638 = dma.done.wait [#allocation4], 1024  }
 0x1c3   :  { %639 = vsyncadd [#allocation4], 4294966272 }
 0x1c4   :  { %435 = vsyncpa [#allocation3], 1 }
 0x1c5   :  { %436 = vsyncpa [#allocation6], 1 }
 0x1c6   :  { %437 = vsyncpa [#allocation4], 1 }

</bundles_post_ra>
